<compile_context>
chip_gen: v6e
topology: v6e:2x2x1
jax: 0.10.0
libtpu: 0.0.40
codegen_flags: <defaults>
</compile_context>

<pallas_src>
import jax
import jax.numpy as jnp
from jax.experimental import pallas as pl
from jax.experimental.pallas import tpu as pltpu


def _sss_kernel(x_ref, w1_ref, b1_ref, wf_ref, bf_ref, o_ref, acc_ref):
    """One (batch_tile, seq_tile) step of the fused forward pass."""
    s_idx = pl.program_id(1)

    @pl.when(s_idx == 0)
    def _init():
        acc_ref[...] = jnp.zeros_like(acc_ref)

    bb, ts, din = x_ref.shape
    # Flatten tokens so the W1 matmul is one big (BB*TS, Din) @ (Din, H) MXU pass.
    x = x_ref[...].reshape(bb * ts, din)
    h1 = jnp.dot(x, w1_ref[...], preferred_element_type=jnp.float32) + b1_ref[...]
    h1 = jax.nn.sigmoid(h1)                                    # (BB*TS, H) f32, EUP path
    # Per-batch partial sum over this sequence tile (XLU cross-sublane reduce).
    acc_ref[...] += h1.reshape(bb, ts, -1).sum(axis=1)         # (BB, H)

    @pl.when(s_idx == pl.num_programs(1) - 1)
    def _finalize():
        # 1/S is pre-folded into wf, so the seq-sum feeds the fused matmul directly.
        m = acc_ref[...].astype(wf_ref.dtype)                  # (BB, H)
        y = jnp.dot(m, wf_ref[...], preferred_element_type=jnp.float32) + bf_ref[...]
        o_ref[...] = y.astype(o_ref.dtype)                     # (BB, Dout_pad), lane-dense

def _pick_seq_tile(seq_len, batch_tile, feat, dtype_bytes, max_bytes=4 * 1024 * 1024):
    """Largest seq tile that divides seq_len, is sublane-aligned, and fits a VMEM budget."""
    if batch_tile * seq_len * feat * dtype_bytes <= max_bytes:
        return seq_len
    cap = max(8, max_bytes // (batch_tile * feat * dtype_bytes))
    for ts in range(min(cap, seq_len), 7, -1):
        if seq_len % ts == 0 and ts % 8 == 0:
            return ts
    # TODO(synk): ragged / prime sequence lengths fall back to a single (whole-seq) tile.
    return seq_len


def sss_linear_llm(x, params, *, compute_dtype=jnp.bfloat16, batch_tile=8):
    """x: (B, S, Din) float32. params: dict of weights/biases. Returns (B, Dout) f32."""
    B, S, Din = x.shape
    H = params["w1"].shape[1]
    Dout = params["w4"].shape[1]

    # ---- host-side algebraic fusion: mean commutes past W2/W3/W4 ----
    # Fold the 1/S mean scaling into the fused weight so the kernel works on raw sums.
    wf = (params["w2"] @ params["w3"] @ params["w4"]) * (1.0 / S)                    # (H, Dout)
    bf = (params["b2"] @ params["w3"] + params["b3"]) @ params["w4"] + params["b4"]  # (1, Dout)

    # Pad output lanes to a multiple of 128 -> unmasked, lane-dense stores.
    Dout_pad = pl.cdiv(Dout, 128) * 128
    wf = jnp.pad(wf, ((0, 0), (0, Dout_pad - Dout)))
    bf = jnp.pad(bf, ((0, 0), (0, Dout_pad - Dout)))

    # Pad batch to a multiple of the batch tile (padded rows are sliced off afterwards).
    BB = batch_tile
    B_pad = pl.cdiv(B, BB) * BB
    if B_pad != B:
        x = jnp.pad(x, ((0, B_pad - B), (0, 0), (0, 0)))

    # MXU inputs in compute_dtype (bf16 by default), f32 accumulation; biases stay f32.
    x_c = x.astype(compute_dtype)
    w1_c = params["w1"].astype(compute_dtype)
    wf_c = wf.astype(compute_dtype)
    b1_c = params["b1"].astype(jnp.float32)
    bf_c = bf.astype(jnp.float32)

    TS = _pick_seq_tile(S, BB, Din, jnp.dtype(compute_dtype).itemsize)
    grid = (B_pad // BB, S // TS)

    out = pl.pallas_call(
        _sss_kernel,
        out_shape=jax.ShapeDtypeStruct((B_pad, Dout_pad), jnp.float32),
        grid_spec=pltpu.PrefetchScalarGridSpec(
            num_scalar_prefetch=0,
            grid=grid,
            in_specs=[
                pl.BlockSpec((BB, TS, Din), lambda b, s: (b, s, 0)),   # x tile
                pl.BlockSpec((Din, H), lambda b, s: (0, 0)),           # W1 (resident)
                pl.BlockSpec((1, H), lambda b, s: (0, 0)),             # b1
                pl.BlockSpec((H, Dout_pad), lambda b, s: (0, 0)),      # fused (1/S)*W2@W3@W4
                pl.BlockSpec((1, Dout_pad), lambda b, s: (0, 0)),      # fused bias
            ],
            out_specs=pl.BlockSpec((BB, Dout_pad), lambda b, s: (b, 0)),
            scratch_shapes=[pltpu.VMEM((BB, H), jnp.float32)],         # seq-sum accumulator
        ),
        compiler_params=pltpu.CompilerParams(
            dimension_semantics=("parallel", "arbitrary"),
            vmem_limit_bytes=48 * 1024 * 1024,
        ),
    )(x_c, w1_c, b1_c, wf_c, bf_c)

    return out[:B, :Dout]


def init_params(key, input_dim, hidden_dim, output_dim):
    """Deterministic synthetic parameters (shapes match the PyTorch module)."""
    ks = jax.random.split(key, 8)

    def lin(kw, kb, fan_in, fan_out):
        bound = 1.0 / (fan_in ** 0.5)
        w = jax.random.uniform(kw, (fan_in, fan_out), jnp.float32, -bound, bound)
        b = jax.random.uniform(kb, (1, fan_out), jnp.float32, -bound, bound)
        return w, b

    w1, b1 = lin(ks[0], ks[1], input_dim, hidden_dim)    # sparse_layer.fc
    w2, b2 = lin(ks[2], ks[3], hidden_dim, hidden_dim)   # hierarchical_layer.fc
    w3, b3 = lin(ks[4], ks[5], hidden_dim, hidden_dim)   # compression_layer.fc
    w4, b4 = lin(ks[6], ks[7], hidden_dim, output_dim)   # fc_output
    return dict(w1=w1, b1=b1, w2=w2, b2=b2, w3=w3, b3=b3, w4=w4, b4=b4)


def _reference(x, p):
    """Unfused, layer-by-layer pure-JAX reference (mirrors the PyTorch forward)."""
    h1 = jax.nn.sigmoid(jnp.einsum("bsd,dh->bsh", x, p["w1"]) + p["b1"][0])
    h2 = jnp.einsum("bsh,hk->bsk", h1, p["w2"]) + p["b2"][0]
    h3 = jnp.einsum("bsh,hk->bsk", h2, p["w3"]) + p["b3"][0]
    m = h3.mean(axis=1)
    return m @ p["w4"] + p["b4"][0]


if __name__ == "__main__":
    B, S = 2, 8
    input_dim, hidden_dim, output_dim = 32, 32, 32

    key = jax.random.PRNGKey(0)
    kx, kp = jax.random.split(key)
    x = jax.random.normal(kx, (B, S, input_dim), jnp.float32)
    params = init_params(kp, input_dim, hidden_dim, output_dim)

    ref = _reference(x, params)

    # f32 MXU path: tight check (fused-weight math is exact; fp summation order differs).
    out_f32 = jax.block_until_ready(sss_linear_llm(x, params, compute_dtype=jnp.float32))
    assert out_f32.shape == (B, output_dim), out_f32.shape
    assert jnp.allclose(out_f32, ref, atol=1e-4, rtol=1e-4), (out_f32, ref)

    # bf16 MXU path (default; ~2-4x matmul throughput, half the weight VMEM): loose check.
    out_bf16 = jax.block_until_ready(sss_linear_llm(x, params))
    assert out_bf16.shape == (B, output_dim), out_bf16.shape
    assert jnp.allclose(out_bf16, ref, atol=5e-2, rtol=5e-2), (out_bf16, ref)

    print("KERNEL_OK")
</pallas_src>

<mosaic_0001>
module attributes {stable_mosaic.version = 11 : i64} {
  func.func @_sss_kernel(%arg0: i32, %arg1: i32, %arg2: memref<8x8x32xf32, #tpu.memory_space<vmem>>, %arg3: memref<32x32xf32, #tpu.memory_space<vmem>>, %arg4: memref<1x32xf32, #tpu.memory_space<vmem>>, %arg5: memref<32x128xf32, #tpu.memory_space<vmem>>, %arg6: memref<1x128xf32, #tpu.memory_space<vmem>>, %arg7: memref<8x128xf32, #tpu.memory_space<vmem>>, %arg8: memref<8x32xf32, #tpu.memory_space<vmem>>) attributes {dimension_semantics = [#tpu.dimension_semantics<parallel>, #tpu.dimension_semantics<arbitrary>], iteration_bounds = array<i64: 1, 1>, scalar_prefetch = 0 : i64, scratch_operands = 1 : i64, tpu.core_type = #tpu.core_type<tc>, window_params = [{transform_indices = @transform_0, window_bounds = array<i64: 8, 8, 32>}, {pipeline_mode = #tpu.pipeline_mode<synchronous>, transform_indices = @transform_1, window_bounds = array<i64: 32, 32>}, {pipeline_mode = #tpu.pipeline_mode<synchronous>, transform_indices = @transform_2, window_bounds = array<i64: 1, 32>}, {pipeline_mode = #tpu.pipeline_mode<synchronous>, transform_indices = @transform_3, window_bounds = array<i64: 32, 128>}, {pipeline_mode = #tpu.pipeline_mode<synchronous>, transform_indices = @transform_4, window_bounds = array<i64: 1, 128>}, {transform_indices = @transform_5, window_bounds = array<i64: 8, 128>}]} {
    %c0_i32 = arith.constant 0 : i32
    %0 = arith.cmpi eq, %arg1, %c0_i32 : i32
    %1 = arith.extui %0 : i1 to i32
    %c0_i32_0 = arith.constant 0 : i32
    %2 = arith.cmpi ne, %1, %c0_i32_0 : i32
    scf.if %2 {
      %cst_15 = arith.constant 0.000000e+00 : f32
      %23 = vector.broadcast %cst_15 : f32 to vector<8x32xf32>
      %c0_16 = arith.constant 0 : index
      %c0_17 = arith.constant 0 : index
      %24 = vector.load %arg8[%c0_16, %c0_17] : memref<8x32xf32, #tpu.memory_space<vmem>>, vector<8x32xf32>
      tpu.vector_store %arg8[%c0_16, %c0_17], %23 {strides = array<i32>} : memref<8x32xf32, #tpu.memory_space<vmem>>, vector<8x32xf32>,
    } else {
    }
    %c0 = arith.constant 0 : index
    %c0_1 = arith.constant 0 : index
    %c0_2 = arith.constant 0 : index
    %3 = vector.load %arg2[%c0, %c0_1, %c0_2] : memref<8x8x32xf32, #tpu.memory_space<vmem>>, vector<8x8x32xf32>
    %4 = vector.shape_cast %3 : vector<8x8x32xf32> to vector<64x32xf32>
    %c0_3 = arith.constant 0 : index
    %c0_4 = arith.constant 0 : index
    %5 = vector.load %arg3[%c0_3, %c0_4] : memref<32x32xf32, #tpu.memory_space<vmem>>, vector<32x32xf32>
    %cst = arith.constant dense<0.000000e+00> : vector<64x32xf32>
    %6 = tpu.matmul %4, %5, %cst {dimension_numbers = #tpu.dot_dimension_numbers<[1], [0], [0], [1], [0, 0, 1, 1], [], []>} : vector<64x32xf32>, vector<32x32xf32>, vector<64x32xf32> -> vector<64x32xf32>
    %c0_5 = arith.constant 0 : index
    %c0_6 = arith.constant 0 : index
    %7 = vector.load %arg4[%c0_5, %c0_6] : memref<1x32xf32, #tpu.memory_space<vmem>>, vector<1x32xf32>
    %8 = vector.broadcast %7 : vector<1x32xf32> to vector<64x32xf32>
    %9 = arith.addf %6, %8 : vector<64x32xf32>
    %10 = arith.negf %9 : vector<64x32xf32>
    %11 = math.exp %10 : vector<64x32xf32>
    %cst_7 = arith.constant 1.000000e+00 : f32
    %12 = vector.broadcast %cst_7 : f32 to vector<64x32xf32>
    %13 = arith.addf %12, %11 : vector<64x32xf32>
    %14 = arith.divf %12, %13 : vector<64x32xf32>
    %c0_8 = arith.constant 0 : index
    %c0_9 = arith.constant 0 : index
    %15 = vector.load %arg8[%c0_8, %c0_9] : memref<8x32xf32, #tpu.memory_space<vmem>>, vector<8x32xf32>
    %16 = vector.shape_cast %14 : vector<64x32xf32> to vector<8x8x32xf32>
    %cst_10 = arith.constant dense<0.000000e+00> : vector<8x32xf32>
    %17 = vector.multi_reduction <add>, %16, %cst_10 [1] : vector<8x8x32xf32> to vector<8x32xf32>
    %18 = arith.addf %15, %17 : vector<8x32xf32>
    %c0_11 = arith.constant 0 : index
    %c0_12 = arith.constant 0 : index
    %19 = vector.load %arg8[%c0_11, %c0_12] : memref<8x32xf32, #tpu.memory_space<vmem>>, vector<8x32xf32>
    tpu.vector_store %arg8[%c0_11, %c0_12], %18 {strides = array<i32>} : memref<8x32xf32, #tpu.memory_space<vmem>>, vector<8x32xf32>,
    %c0_i32_13 = arith.constant 0 : i32
    %20 = arith.cmpi eq, %arg1, %c0_i32_13 : i32
    %21 = arith.extui %20 : i1 to i32
    %c0_i32_14 = arith.constant 0 : i32
    %22 = arith.cmpi ne, %21, %c0_i32_14 : i32
    scf.if %22 {
      %c0_15 = arith.constant 0 : index
      %c0_16 = arith.constant 0 : index
      %23 = vector.load %arg8[%c0_15, %c0_16] : memref<8x32xf32, #tpu.memory_space<vmem>>, vector<8x32xf32>
      %c0_17 = arith.constant 0 : index
      %c0_18 = arith.constant 0 : index
      %24 = vector.load %arg5[%c0_17, %c0_18] : memref<32x128xf32, #tpu.memory_space<vmem>>, vector<32x128xf32>
      %cst_19 = arith.constant dense<0.000000e+00> : vector<8x128xf32>
      %25 = tpu.matmul %23, %24, %cst_19 {dimension_numbers = #tpu.dot_dimension_numbers<[1], [0], [0], [1], [0, 0, 1, 1], [], []>} : vector<8x32xf32>, vector<32x128xf32>, vector<8x128xf32> -> vector<8x128xf32>
      %c0_20 = arith.constant 0 : index
      %c0_21 = arith.constant 0 : index
      %26 = vector.load %arg6[%c0_20, %c0_21] : memref<1x128xf32, #tpu.memory_space<vmem>>, vector<1x128xf32>
      %27 = vector.broadcast %26 : vector<1x128xf32> to vector<8x128xf32>
      %28 = arith.addf %25, %27 : vector<8x128xf32>
      %c0_22 = arith.constant 0 : index
      %c0_23 = arith.constant 0 : index
      %29 = vector.load %arg7[%c0_22, %c0_23] : memref<8x128xf32, #tpu.memory_space<vmem>>, vector<8x128xf32>
      tpu.vector_store %arg7[%c0_22, %c0_23], %28 {strides = array<i32>} : memref<8x128xf32, #tpu.memory_space<vmem>>, vector<8x128xf32>,
    } else {
    }
    return
  }
  func.func @transform_0(%arg0: i32, %arg1: i32) -> (i32, i32, i32) {
    %c0_i32 = arith.constant 0 : i32
    %c0_i32_0 = arith.constant 0 : i32
    return %arg0, %arg1, %c0_i32 : i32, i32, i32
  }
  func.func @transform_1(%arg0: i32, %arg1: i32) -> (i32, i32) {
    %c0_i32 = arith.constant 0 : i32
    %c0_i32_0 = arith.constant 0 : i32
    %c0_i32_1 = arith.constant 0 : i32
    return %c0_i32, %c0_i32_0 : i32, i32
  }
  func.func @transform_2(%arg0: i32, %arg1: i32) -> (i32, i32) {
    %c0_i32 = arith.constant 0 : i32
    %c0_i32_0 = arith.constant 0 : i32
    %c0_i32_1 = arith.constant 0 : i32
    return %c0_i32, %c0_i32_0 : i32, i32
  }
  func.func @transform_3(%arg0: i32, %arg1: i32) -> (i32, i32) {
    %c0_i32 = arith.constant 0 : i32
    %c0_i32_0 = arith.constant 0 : i32
    %c0_i32_1 = arith.constant 0 : i32
    return %c0_i32, %c0_i32_0 : i32, i32
  }
  func.func @transform_4(%arg0: i32, %arg1: i32) -> (i32, i32) {
    %c0_i32 = arith.constant 0 : i32
    %c0_i32_0 = arith.constant 0 : i32
    %c0_i32_1 = arith.constant 0 : i32
    return %c0_i32, %c0_i32_0 : i32, i32
  }
  func.func @transform_5(%arg0: i32, %arg1: i32) -> (i32, i32) {
    %c0_i32 = arith.constant 0 : i32
    %c0_i32_0 = arith.constant 0 : i32
    return %arg0, %c0_i32 : i32, i32
  }
}

</mosaic_0001>

<bundles_post_ra>
// kernel: tpu_custom_call.1
= control target key start
LH: loop header
LB: loop body
LE: loop exit
PB: predicated region body
PF: predicated region fallthrough
CT: control target
= control target key end

     0   :  { %10 = vsyncpa [#allocation4], 0  ;;  %s720_s0 = inlined_call_operand.hbm [shape: f32[8,8,32], index: 0, kind: input, shape index: {}]   ;;  %s721_s1 = inlined_call_operand.hbm [shape: f32[32,32], index: 1, kind: input, shape index: {}]   ;;  %s722_s2 = inlined_call_operand.vmem [shape: f32[1,32], index: 2, kind: input, shape index: {}]   ;;  %s723_s3 = inlined_call_operand.hbm [shape: f32[32,128], index: 3, kind: input, shape index: {}]   ;;  %s724_s4 = inlined_call_operand.vmem [shape: f32[1,128], index: 4, kind: input, shape index: {}]   ;;  %s725_s5 = inlined_call_operand.hbm [shape: f32[8,128], index: 5, kind: output, shape index: {}]  }
   0x1   :  { %11 = vsyncpa [#allocation7], 0 }
   0x2   :  { %12 = vsyncpa [#allocation5], 0  ;;  %s645_s18 = smov [#allocation6]   ;;  %s646_s20 = smov [#allocation3]  }
   0x3   :  { %s30_s19 = sshll.u32 %s645_s18, 4  ;;  %s18_s21 = sshll.u32 %s646_s20, 4  ;;  %s31_s19 = int_to_ptr.vmem [resolvable:$true] %s30_s19  ;;  %s19_s21 = int_to_ptr.vmem [resolvable:$true] %s18_s21 }
   0x4   :  { %s567_s22 = scalar_lea.vmem %s31_s19, 512  ;;  %p572_p1 = scmp.lt.s32.totalorder %s31_s19, %s31_s19 }
   0x5   :  { %p568_p0 = scmp.ne.s32.totalorder %s31_s19, %s567_s22  ;;  %p573_p2 = scmp.lt.s32.totalorder %s567_s22, %s567_s22 }
   0x7   :  { %p574_p3 = por %p573_p2, %p572_p1 }
   0x9   :  { %p575_p4 = pnand %p574_p3, %p568_p0 }
   0xb   :  { %578 = shalt.err (!%p575_p4)
}
   0xc   :  { %s647_s23 = smov 128   ;;  %s648_s24 = smov 8  }
   0xd   :  { %36 = dma.hbm_to_vmem [thread:$0]  %s721_s1, 512, %s31_s19, [#allocation7], %s647_s23, %s647_s23, %s648_s24  }
   0xe   :  { %s587_s27 = scalar_lea.vmem %s19_s21, 1024  ;;  %p592_p6 = scmp.lt.s32.totalorder %s19_s21, %s19_s21 }
   0xf   :  { %p588_p5 = scmp.ne.s32.totalorder %s19_s21, %s587_s27  ;;  %p593_p7 = scmp.lt.s32.totalorder %s587_s27, %s587_s27 }
  0x11   :  { %p594_p8 = por %p593_p7, %p592_p6 }
  0x13   :  { %p595_p9 = pnand %p594_p8, %p588_p5 }
  0x15   :  { %598 = shalt.err (!%p595_p9)
}
  0x16   :  { %24 = dma.hbm_to_vmem [thread:$0]  %s720_s0, 1024, %s19_s21, [#allocation4], %s647_s23, %s647_s23, %s648_s24  }
  0x17   :  { %s649_s30 = smov [#allocation8]  }
  0x18   :  { %s44_s6 = sshll.u32 %s649_s30, 4  ;;  %s45_s6 = int_to_ptr.vmem [resolvable:$true] %s44_s6 }
  0x19   :  { %s607_s7 = scalar_lea.vmem %s45_s6, 512  ;;  %p612_p11 = scmp.lt.s32.totalorder %s45_s6, %s45_s6 }
  0x1a   :  { %p608_p10 = scmp.ne.s32.totalorder %s45_s6, %s607_s7  ;;  %p613_p12 = scmp.lt.s32.totalorder %s607_s7, %s607_s7 }
  0x1c   :  { %p614_p13 = por %p613_p12, %p612_p11 }
  0x1e   :  { %p615_p0 = pnand %p614_p13, %p608_p10 }
  0x20   :  { %618 = shalt.err (!%p615_p0)
}
  0x21   :  { %50 = dma.hbm_to_vmem [thread:$0]  %s723_s3, 512, %s45_s6, [#allocation7], %s647_s23, %s647_s23, %s648_s24  }
  0x22   :  { %639 = dma.done.wait [#allocation4], 1024  }
  0x23   :  { %640 = vsyncadd [#allocation4], 4294966272 }
  0x24   :  { %641 = dma.done.wait [#allocation7], 1024  }
  0x25   :  { %642 = vsyncadd [#allocation7], 4294966272  ;;  %vm66_vm0 = vcmask 261120   ;;  %v79_v0 = vld [vmem:[#allocation6 + $0x18] sm:$0xff]  ;;  %v78_v1 = vld [vmem:[#allocation6 + $0x10] sm:$0xff]  ;;  %v650_v12 = vmov 0.0  }
  0x26   :  { %488 = vmatprep.subr.mxu0 %v79_v0  ;;  %v68_v2 = vld [vmem:[#allocation3] sm:$0xff]  ;;  %v77_v3 = vld [vmem:[#allocation6 + $0x8] sm:$0xff]  ;;  %v70_v6 = vld [vmem:[#allocation3 + $0x10] sm:$0xff]  ;;  %67 = vst.msk [vmem:[#allocation2] sm:$0xff] %vm66_vm0, %v650_v12  ;;  %508 = vmatprep.subr.mxu1 %v650_v12  ;;  %vm651_vm1 = vmmov 0   ;;  %vm330_vm2 = vcmask 1041409  }
  0x27   :  { %489 = vmatpush3.msra.mxu0 %v79_v0  ;;  %496 = vmatprep.mubr.msk.f32.mxu0 %vm66_vm0, %v68_v2  ;;  %v76_v4 = vld [vmem:[#allocation6] sm:$0xff]  ;;  %v69_v5 = vld [vmem:[#allocation3 + $0x8] sm:$0xff]  ;;  %v71_v7 = vld [vmem:[#allocation3 + $0x18] sm:$0xff]  ;;  %vm332_vm3 = vcmask 1042434   ;;  %vm334_vm4 = vcmask 1043459   ;;  %vm336_vm5 = vcmask 1044484  }
  0x28   :  { %490 = vmatprep.subr.mxu0 %v78_v1  ;;  %v72_v8 = vld [vmem:[#allocation3 + $0x20] sm:$0xff]  ;;  %v73_v9 = vld [vmem:[#allocation3 + $0x28] sm:$0xff]  ;;  %v74_v10 = vld [vmem:[#allocation3 + $0x30] sm:$0xff]  ;;  %516 = vmatprep.mubr.msk.f32.mxu1 %vm651_vm1, %v650_v12  ;;  %vm338_vm6 = vcmask 1045509   ;;  %vm340_vm7 = vcmask 1046534   ;;  %vm342_vm8 = vcmask 1047559  }
  0x29   :  { %491 = vmatpush3.msra.mxu0 %v78_v1  ;;  %v75_v11 = vld [vmem:[#allocation3 + $0x38] sm:$0xff]  ;;  %v353_v14 = vld [vmem:[#allocation8 + $0x10] sm:$0xff]  ;;  %v352_v15 = vld [vmem:[#allocation8 + $0x8] sm:$0xff]  ;;  %s652_s10 = smov [#allocation9]  }
  0x2a   :  { %492 = vmatprep.subr.mxu0 %v77_v3  ;;  %v354_v13 = vld [vmem:[#allocation8 + $0x18] sm:$0xff]  ;;  %v351_v16 = vld [vmem:[#allocation8] sm:$0xff]  ;;  %s442_s11 = sshll.u32 %s652_s10, 4  ;;  %s443_s11 = int_to_ptr.vmem [resolvable:$true] %s442_s11 }
  0x2b   :  { %493 = vmatpush3.msra.mxu0 %v77_v3  ;;  %509 = vmatpush3.msra.mxu1 %v354_v13  ;;  %v452_v17 = vld [vmem:[%s722_s2] ss:$0 sm:$0xff]  ;;  %s619_s12 = scalar_lea.vmem %s443_s11, 128  ;;  %p624_p2 = scmp.lt.s32.totalorder %s443_s11, %s443_s11 }
  0x2c   :  { %494 = vmatprep.subr.mxu0 %v76_v4  ;;  %510 = vmatprep.subr.mxu1 %v650_v12  ;;  %p620_p1 = scmp.ne.s32.totalorder %s443_s11, %s619_s12  ;;  %p625_p3 = scmp.lt.s32.totalorder %s619_s12, %s619_s12 }
  0x2d   :  { %495 = vmatpush3.msra.mxu0 %v76_v4  ;;  %511 = vmatpush3.msra.mxu1 %v353_v14 }
  0x2e   :  { %497 = vmatmul.mubr.msk.f32.vlgmr.msra.gmra.mxu0 %vm66_vm0, %v69_v5  ;;  %512 = vmatprep.subr.mxu1 %v650_v12  ;;  %p626_p4 = por %p625_p3, %p624_p2 }
  0x2f   :  { %499 = vmatprep.mubr.msk.f32.mxu0 %vm66_vm0, %v70_v6  ;;  %513 = vmatpush3.msra.mxu1 %v352_v15 }
  0x30   :  { %514 = vmatprep.subr.mxu1 %v650_v12  ;;  %p627_p5 = pnand %p626_p4, %p620_p1 }
  0x31   :  { %515 = vmatpush3.msra.mxu1 %v351_v16 }
  0x32   :  { %500 = vmatmul.mubr.msk.f32.gmra.mxu0 %vm66_vm0, %v71_v7 }
  0x33   :  { %502 = vmatprep.mubr.msk.f32.mxu0 %vm66_vm0, %v72_v8 }
  0x36   :  { %503 = vmatmul.mubr.msk.f32.gmra.mxu0 %vm66_vm0, %v73_v9 }
  0x37   :  { %505 = vmatprep.mubr.msk.f32.mxu0 %vm66_vm0, %v74_v10 }
  0x3a   :  { %506 = vmatmul.mubr.msk.f32.gmra.mxu0 %vm66_vm0, %v75_v11 }
  0xee   :  { %v498_v18 = vpop.f32.mrf.mxu0 }
  0xef   :  { %v184_v19 = vadd.f32 %v498_v18, %v452_v17 }
  0xf0   :  { %v178_v20 = vpop.f32.mrf.mxu0 }
  0xf1   :  { %v462_v21 = vmul.f32 -1.442695, %v184_v19  ;;  %v179_v22 = vadd.f32 %v452_v17, %v178_v20 }
  0xf2   :  { %v501_v23 = vpop.f32.mrf.mxu0 }
  0xf3   :  { %527 = vpow2.f32 %v462_v21  ;;  %v461_v24 = vmul.f32 -1.442695, %v179_v22  ;;  %v194_v25 = vadd.f32 %v501_v23, %v452_v17 }
  0xf4   :  { %v188_v26 = vpop.f32.mrf.mxu0 }
  0xf5   :  { %529 = vpow2.f32 %v461_v24  ;;  %v464_v27 = vmul.f32 -1.442695, %v194_v25  ;;  %v189_v28 = vadd.f32 %v452_v17, %v188_v26 }
  0xf6   :  { %v504_v29 = vpop.f32.mrf.mxu0 }
  0xf7   :  { %531 = vpow2.f32 %v464_v27  ;;  %v463_v30 = vmul.f32 -1.442695, %v189_v28  ;;  %v204_v31 = vadd.f32 %v504_v29, %v452_v17 }
  0xf8   :  { %v198_v32 = vpop.f32.mrf.mxu0 }
  0xf9   :  { %533 = vpow2.f32 %v463_v30  ;;  %v466_v33 = vmul.f32 -1.442695, %v204_v31  ;;  %v199_v34 = vadd.f32 %v452_v17, %v198_v32 }
  0xfa   :  { %v507_v35 = vpop.f32.mrf.mxu0 }
  0xfb   :  { %535 = vpow2.f32 %v466_v33  ;;  %v465_v36 = vmul.f32 -1.442695, %v199_v34  ;;  %v214_v37 = vadd.f32 %v507_v35, %v452_v17 }
  0xfc   :  { %v208_v38 = vpop.f32.mrf.mxu0 }
  0xfd   :  { %537 = vpow2.f32 %v465_v36  ;;  %v468_v39 = vmul.f32 -1.442695, %v214_v37  ;;  %v209_v40 = vadd.f32 %v452_v17, %v208_v38 }
  0xff   :  { %539 = vpow2.f32 %v468_v39  ;;  %v467_v41 = vmul.f32 -1.442695, %v209_v40 }
 0x100   :  { %v528_v42 = vpop.eup %527 }
 0x101   :  { %v242_v43 = vadd.f32 1.0, %v528_v42  ;;  %541 = vpow2.f32 %v467_v41 }
 0x102   :  { %v530_v44 = vpop.eup %529 }
 0x103   :  { %543 = vrcp.f32 %v242_v43  ;;  %v241_v45 = vadd.f32 1.0, %v530_v44 }
 0x104   :  { %v532_v46 = vpop.eup %531 }
 0x105   :  { %545 = vrcp.f32 %v241_v45  ;;  %v244_v47 = vadd.f32 1.0, %v532_v46 }
 0x106   :  { %v534_v48 = vpop.eup %533 }
 0x107   :  { %547 = vrcp.f32 %v244_v47  ;;  %v243_v49 = vadd.f32 1.0, %v534_v48 }
 0x108   :  { %v536_v50 = vpop.eup %535 }
 0x109   :  { %549 = vrcp.f32 %v243_v49  ;;  %v246_v51 = vadd.f32 1.0, %v536_v50 }
 0x10a   :  { %v538_v52 = vpop.eup %537 }
 0x10b   :  { %551 = vrcp.f32 %v246_v51  ;;  %v245_v53 = vadd.f32 1.0, %v538_v52 }
 0x10c   :  { %v540_v54 = vpop.eup %539 }
 0x10d   :  { %553 = vrcp.f32 %v245_v53  ;;  %v248_v55 = vadd.f32 1.0, %v540_v54 }
 0x10e   :  { %v542_v56 = vpop.eup %541 }
 0x10f   :  { %555 = vrcp.f32 %v248_v55  ;;  %v247_v57 = vadd.f32 1.0, %v542_v56 }
 0x110   :  { %v544_v58 = vpop.eup %543 }
 0x111   :  { %v273_v59 = vsel %vm66_vm0, %v544_v58, 0.0  ;;  %557 = vrcp.f32 %v247_v57 }
 0x112   :  { %v546_v60 = vpop.eup %545  ;;  %v274_v61 = vrot.slane %v273_v59, 4 }
 0x113   :  { %v266_v62 = vsel %vm66_vm0, %v546_v60, 0.0 }
 0x114   :  { %v548_v63 = vpop.eup %547  ;;  %v275_v0 = vadd.f32 %v274_v61, %v273_v59  ;;  %v267_v1 = vrot.slane %v266_v62, 4 }
 0x115   :  { %v287_v2 = vsel %vm66_vm0, %v548_v63, 0.0  ;;  %v265_v63 = vld [vmem:[#allocation2] sm:$0xff] }
 0x116   :  { %v550_v3 = vpop.eup %549  ;;  %v276_v4 = vrot.slane %v275_v0, 2  ;;  %v268_v5 = vadd.f32 %v267_v1, %v266_v62  ;;  %v288_v6 = vrot.slane %v287_v2, 4 }
 0x117   :  { %v280_v7 = vsel %vm66_vm0, %v550_v3, 0.0 }
 0x118   :  { %v552_v8 = vpop.eup %551  ;;  %v269_v9 = vrot.slane %v268_v5, 2  ;;  %v289_v10 = vadd.f32 %v288_v6, %v287_v2  ;;  %v281_v11 = vrot.slane %v280_v7, 4  ;;  %v277_v12 = vadd.f32 %v276_v4, %v275_v0  ;;  %v469_v4 = vld [vmem:[%s724_s4] ss:$0 sm:$0xff] }
 0x119   :  { %v301_v13 = vsel %vm66_vm0, %v552_v8, 0.0 }
 0x11a   :  { %v554_v14 = vpop.eup %553  ;;  %v270_v15 = vadd.f32 %v269_v9, %v268_v5  ;;  %v290_v16 = vrot.slane %v289_v10, 2  ;;  %v282_v17 = vadd.f32 %v281_v11, %v280_v7  ;;  %v302_v18 = vrot.slane %v301_v13, 4 }
 0x11b   :  { %v294_v19 = vsel %vm66_vm0, %v554_v14, 0.0  ;;  %v278_v23 = vrot.slane %v277_v12, 1 }
 0x11c   :  { %v556_v20 = vpop.eup %555  ;;  %v271_v21 = vrot.slane %v270_v15, 1  ;;  %v283_v22 = vrot.slane %v282_v17, 2  ;;  %v303_v24 = vadd.f32 %v302_v18, %v301_v13  ;;  %v295_v25 = vrot.slane %v294_v19, 4 }
 0x11d   :  { %v315_v26 = vsel %vm66_vm0, %v556_v20, 0.0  ;;  %v291_v28 = vadd.f32 %v290_v16, %v289_v10  ;;  %v279_v37 = vadd.f32 %v278_v23, %v277_v12 }
 0x11e   :  { %v558_v27 = vpop.eup %557  ;;  %v284_v29 = vadd.f32 %v283_v22, %v282_v17  ;;  %v316_v30 = vrot.slane %v315_v26, 4  ;;  %v304_v31 = vrot.slane %v303_v24, 2  ;;  %v296_v32 = vadd.f32 %v295_v25, %v294_v19 }
 0x11f   :  { %v308_v33 = vsel %vm66_vm0, %v558_v27, 0.0  ;;  %v272_v34 = vadd.f32 %v271_v21, %v270_v15  ;;  %v292_v40 = vrot.slane %v291_v28, 1 }
 0x120   :  { %v285_v35 = vrot.slane %v284_v29, 1  ;;  %v317_v36 = vadd.f32 %v316_v30, %v315_v26  ;;  %v297_v38 = vrot.slane %v296_v32, 2  ;;  %v309_v39 = vrot.slane %v308_v33, 4 }
 0x121   :  { %v305_v42 = vadd.f32 %v304_v31, %v303_v24  ;;  %v331_v46 = vsel %vm330_vm2, %v279_v37, %v272_v34  ;;  %v293_v51 = vadd.f32 %v292_v40, %v291_v28 }
 0x122   :  { %v286_v41 = vadd.f32 %v285_v35, %v284_v29  ;;  %v318_v43 = vrot.slane %v317_v36, 2  ;;  %v298_v44 = vadd.f32 %v297_v38, %v296_v32  ;;  %v310_v45 = vadd.f32 %v309_v39, %v308_v33 }
 0x123   :  { %v306_v52 = vrot.slane %v305_v42, 1 }
 0x124   :  { %v319_v47 = vadd.f32 %v318_v43, %v317_v36  ;;  %v333_v48 = vsel %vm332_vm3, %v286_v41, %v331_v46  ;;  %v299_v49 = vrot.slane %v298_v44, 1  ;;  %v311_v50 = vrot.slane %v310_v45, 2 }
 0x125   :  { %v335_v55 = vsel %vm334_vm4, %v293_v51, %v333_v48  ;;  %v307_v59 = vadd.f32 %v306_v52, %v305_v42 }
 0x126   :  { %v300_v53 = vadd.f32 %v299_v49, %v298_v44  ;;  %v312_v54 = vadd.f32 %v311_v50, %v310_v45  ;;  %v320_v56 = vrot.slane %v319_v47, 1 }
 0x128   :  { %v337_v57 = vsel %vm336_vm5, %v300_v53, %v335_v55  ;;  %v313_v58 = vrot.slane %v312_v54, 1  ;;  %v321_v61 = vadd.f32 %v320_v56, %v319_v47 }
 0x129   :  { %v339_v62 = vsel %vm338_vm6, %v307_v59, %v337_v57 }
 0x12a   :  { %v314_v60 = vadd.f32 %v313_v58, %v312_v54 }
 0x12c   :  { %v341_v0 = vsel %vm340_vm7, %v314_v60, %v339_v62 }
 0x12d   :  { %v343_v1 = vsel %vm342_vm8, %v321_v61, %v341_v0 }
 0x12e   :  { %v345_v2 = vadd.f32 %v343_v1, %v265_v63 }
 0x130   :  { %346 = vst.msk [vmem:[#allocation2] sm:$0xff] %vm66_vm0, %v345_v2 }
 0x137   :  { %v350_v3 = vld [vmem:[#allocation2] sm:$0xff] }
 0x138   :  { %517 = vmatmul.mubr.msk.f32.vlgmr.msra.gmra.mxu1 %vm66_vm0, %v350_v3 }
 0x1f8   :  { %v431_v5 = vpop.f32.mrf.mxu1 }
 0x1f9   :  { %v432_v6 = vadd.f32 %v469_v4, %v431_v5 }
 0x1fa   :  { %v518_v7 = vpop.f32.mrf.mxu1 }
 0x1fb   :  { %435 = vst [vmem:[#allocation9] sm:$0xff] %v432_v6 }
 0x1fc   :  { %630 = shalt.err (!%p627_p5)
}
 0x1fd   :  { %445 = dma.vmem_to_hbm [thread:$0]  %s443_s11, 128, %s725_s5, [#allocation5]  }
 0x1fe   :  { %643 = dma.done.wait [#allocation5], 128  }
 0x1ff   :  { %644 = vsyncadd [#allocation5], 4294967168 }
 0x200   :  { %449 = vsyncpa [#allocation4], 1 }
 0x201   :  { %450 = vsyncpa [#allocation7], 1 }
 0x202   :  { %451 = vsyncpa [#allocation5], 1 }

</bundles_post_ra>
